<compile_context>
chip_gen: v7x
topology: tpu7x:2x2x1
jax: 0.10.0
libtpu: 0.0.40
codegen_flags: <defaults>
</compile_context>

<pallas_src>
import jax
import jax.numpy as jnp
from jax.experimental import pallas as pl
from jax.experimental.pallas import tpu as pltpu


def _cvae_kernel(
    x_ref, cond_ref, eps_ref,
    we0_ref, be0_ref,             # encoder layer 0: input_dim -> h0
    we1_ref, be1_ref,             # encoder layer 1: h0 -> h1
    whead_ref, bhead_ref,         # fused [fc_mu | fc_logvar], placed in packed cols [0, 2L)
    wd0z_ref, wd0c_ref, bd0_ref,  # decoder layer 0 (split): latent/cond -> h1
    wd1_ref, bd1_ref,             # decoder layer 1: h1 -> h0
    wd2_ref, bd2_ref,             # decoder layer 2: h0 -> input_dim, placed in packed cols [2L, 2L+in)
    out_ref,                      # packed, lane-dense output slab: [mu | logvar | recon | 0-pad]
):
    f32 = jnp.float32
    latent = eps_ref.shape[-1]

    # ----- encoder (all-f32 compute, f32 accumulate) -----
    h = jnp.dot(x_ref[...], we0_ref[...], preferred_element_type=f32) + be0_ref[...]
    h = jnp.maximum(h, 0.0)
    h = jnp.dot(h, we1_ref[...], preferred_element_type=f32) + be1_ref[...]
    h = jnp.maximum(h, 0.0)

    # ----- fused mu | logvar head (one MXU push, already in packed columns) -----
    head = jnp.dot(h, whead_ref[...], preferred_element_type=f32) + bhead_ref[...]
    mu = head[:, :latent]
    logvar = head[:, latent:2 * latent]

    # ----- reparameterize: z = mu + eps * exp(0.5 * logvar) -----
    z = mu + eps_ref[...] * jnp.exp(0.5 * logvar)

    # ----- decoder: cat(z, c) @ W  ==  z @ W[:latent] + c @ W[latent:] -----
    d = (jnp.dot(z, wd0z_ref[...], preferred_element_type=f32)
         + jnp.dot(cond_ref[...], wd0c_ref[...], preferred_element_type=f32)
         + bd0_ref[...])
    d = jnp.maximum(d, 0.0)
    d = jnp.dot(d, wd1_ref[...], preferred_element_type=f32) + bd1_ref[...]
    d = jnp.maximum(d, 0.0)
    recon = jnp.dot(d, wd2_ref[...], preferred_element_type=f32) + bd2_ref[...]

    # head lives in packed columns [0, 2L), recon in [2L, 2L+input_dim), both
    # zero elsewhere -> packing is a single add; one unmasked 128-lane store.
    out_ref[...] = (head + recon).astype(out_ref.dtype)


def _round8(n):
    return ((n + 7) // 8) * 8


def cvae_forward(x, condition, eps, params, *, tb=512, out_dtype=jnp.bfloat16):
    """Fused CVAE forward.

    x:         [B, input_dim] float32
    condition: [B, condition_dim] float32
    eps:       [B, latent_dim] float32 (precomputed randn_like noise)
    params:    dict from pack_params() — f32 [in,out] weights ([1,out] biases),
               with the mu|logvar head and recon projection pre-placed in
               disjoint columns of a 128-lane-aligned packed output slab.
    Returns (recon_x, mu, logvar) in float32.
    """
    B, input_dim = x.shape
    latent = params["wd0z"].shape[0]
    cond_dim = params["wd0c"].shape[0]
    h0 = params["we0"].shape[1]
    h1 = params["we1"].shape[1]
    pack_w = params["whead"].shape[1]          # 128-lane-aligned packed width
    assert pack_w >= 2 * latent + input_dim and pack_w % 128 == 0

    # --- batch tile selection -------------------------------------------------
    # Big tiles amortize the per-step pipeline overhead; clamp to the (8-rounded)
    # batch, and keep >= 2 grid steps when possible so v7x's second TC has work.
    tb = max(8, min(_round8(tb), _round8(B)))
    if pl.cdiv(B, tb) < 2 and B >= 16:
        tb = _round8(pl.cdiv(B, 2))
    n_tiles = pl.cdiv(B, tb)
    # No jnp.pad of x/condition/eps: Pallas handles the ragged last tile (rows
    # are independent; out-of-bounds output rows are masked on store).

    x = x.astype(jnp.float32)
    condition = condition.astype(jnp.float32)
    eps = eps.astype(jnp.float32)

    operands = [
        x, condition, eps,
        params["we0"], params["be0"],
        params["we1"], params["be1"],
        params["whead"], params["bhead"],
        params["wd0z"], params["wd0c"], params["bd0"],
        params["wd1"], params["bd1"],
        params["wd2"], params["bd2"],
    ]

    def batch_spec(a):   # streamed over the batch grid
        return pl.BlockSpec((tb, a.shape[1]), lambda i: (i, 0))

    def resident_spec(a):  # constant index_map -> stays resident in VMEM
        return pl.BlockSpec(a.shape, lambda i: (0, 0))

    in_specs = [batch_spec(x), batch_spec(condition), batch_spec(eps)]
    in_specs += [resident_spec(a) for a in operands[3:]]
    out_spec = pl.BlockSpec((tb, pack_w), lambda i: (i, 0))

    flops = 2 * B * (
        input_dim * h0 + h0 * h1 + h1 * pack_w
        + (latent + cond_dim) * h1 + h1 * h0 + h0 * pack_w
    )
    bytes_accessed = sum(int(a.size) * a.dtype.itemsize for a in operands)
    bytes_accessed += B * pack_w * jnp.dtype(out_dtype).itemsize
    cost = pl.CostEstimate(flops=flops, transcendentals=B * latent,
                           bytes_accessed=bytes_accessed)

    out = pl.pallas_call(
        _cvae_kernel,
        out_shape=jax.ShapeDtypeStruct((B, pack_w), out_dtype),
        grid=(n_tiles,),
        in_specs=in_specs,
        out_specs=out_spec,
        compiler_params=pltpu.CompilerParams(
            dimension_semantics=("parallel",),   # megacore sharding on v7x
            vmem_limit_bytes=32 * 1024 * 1024,   # plenty of headroom, v7x-safe
        ),
        cost_estimate=cost,
    )(*operands)

    mu = out[:, :latent].astype(jnp.float32)
    logvar = out[:, latent:2 * latent].astype(jnp.float32)
    recon = out[:, 2 * latent:2 * latent + input_dim].astype(jnp.float32)
    return recon, mu, logvar


def init_params(key, input_dim, latent_dim, condition_dim, hidden_layers):
    """Deterministic synthetic params (shapes match the torch module).

    Weights are stored transposed relative to torch.nn.Linear: [in, out].
    Biases are stored as [1, out] so they broadcast over the batch dim.
    """
    h0, h1 = hidden_layers
    shapes = {
        "we0": (input_dim, h0), "be0": (1, h0),
        "we1": (h0, h1),        "be1": (1, h1),
        "wmu": (h1, latent_dim), "bmu": (1, latent_dim),
        "wlv": (h1, latent_dim), "blv": (1, latent_dim),
        "wd0z": (latent_dim, h1), "wd0c": (condition_dim, h1), "bd0": (1, h1),
        "wd1": (h1, h0), "bd1": (1, h0),
        "wd2": (h0, input_dim), "bd2": (1, input_dim),
    }
    params = {}
    for name, shp in sorted(shapes.items()):
        key, sub = jax.random.split(key)
        params[name] = 0.1 * jax.random.normal(sub, shp, jnp.float32)
    return params


def pack_params(p):
    """Fuse mu/logvar heads and place head / recon weights into disjoint
    columns of a 128-lane-aligned packed output slab (all f32)."""
    latent = p["wmu"].shape[1]
    input_dim = p["wd2"].shape[1]
    used = 2 * latent + input_dim
    pack_w = ((used + 127) // 128) * 128

    def place(w, b, start):
        width = w.shape[1]
        wp = jnp.zeros((w.shape[0], pack_w), w.dtype).at[:, start:start + width].set(w)
        bp = jnp.zeros((1, pack_w), b.dtype).at[:, start:start + width].set(b)
        return wp, bp

    whead = jnp.concatenate([p["wmu"], p["wlv"]], axis=1)
    bhead = jnp.concatenate([p["bmu"], p["blv"]], axis=1)
    whead_p, bhead_p = place(whead, bhead, 0)              # cols [0, 2L)
    wd2_p, bd2_p = place(p["wd2"], p["bd2"], 2 * latent)   # cols [2L, 2L+in)

    return {
        "we0": p["we0"], "be0": p["be0"],
        "we1": p["we1"], "be1": p["be1"],
        "whead": whead_p, "bhead": bhead_p,
        "wd0z": p["wd0z"], "wd0c": p["wd0c"], "bd0": p["bd0"],
        "wd1": p["wd1"], "bd1": p["bd1"],
        "wd2": wd2_p, "bd2": bd2_p,
    }


if __name__ == "__main__":
    # Small shapes consistent with the module's forward:
    #   x: [B, input_dim], condition: [B, condition_dim]
    B = 64
    input_dim = 32
    latent_dim = 8
    condition_dim = 4
    hidden_layers = (64, 32)

    root = jax.random.PRNGKey(0)
    k_x, k_c, k_eps, k_p = jax.random.split(root, 4)

    x = jax.random.normal(k_x, (B, input_dim), jnp.float32)
    condition = jax.random.normal(k_c, (B, condition_dim), jnp.float32)
    # torch.randn_like(std) noise, precomputed deterministically outside
    eps = jax.random.normal(k_eps, (B, latent_dim), jnp.float32)

    params_f32 = init_params(k_p, input_dim, latent_dim, condition_dim, hidden_layers)
    params = pack_params(params_f32)

    # Default tb=512 clamps to two 32-row tiles here (>= 2 grid steps for v7x).
    recon_x, mu, logvar = cvae_forward(x, condition, eps, params)
    jax.block_until_ready((recon_x, mu, logvar))

    # Pure-JAX f32 reference matching the torch module's forward.
    def ref(x, c, eps, p):
        relu = lambda a: jnp.maximum(a, 0.0)
        h = relu(x @ p["we0"] + p["be0"])
        h = relu(h @ p["we1"] + p["be1"])
        mu_ = h @ p["wmu"] + p["bmu"]
        lv_ = h @ p["wlv"] + p["blv"]
        z = mu_ + eps * jnp.exp(0.5 * lv_)
        w0 = jnp.concatenate([p["wd0z"], p["wd0c"]], axis=0)
        d = relu(jnp.concatenate([z, c], axis=1) @ w0 + p["bd0"])
        d = relu(d @ p["wd1"] + p["bd1"])
        return d @ p["wd2"] + p["bd2"], mu_, lv_

    r_ref, mu_ref_, lv_ref_ = ref(x, condition, eps, params_f32)
    # Compute is f32; only the stored packed output is bf16-rounded.
    assert jnp.allclose(recon_x, r_ref, atol=1e-2, rtol=1e-2)
    assert jnp.allclose(mu, mu_ref_, atol=1e-2, rtol=1e-2)
    assert jnp.allclose(logvar, lv_ref_, atol=1e-2, rtol=1e-2)

    print("KERNEL_OK")
</pallas_src>

<mosaic_0001>
module attributes {stable_mosaic.version = 11 : i64} {
  func.func @_cvae_kernel(%arg0: i32, %arg1: memref<32x32xf32, #tpu.memory_space<vmem>>, %arg2: memref<32x4xf32, #tpu.memory_space<vmem>>, %arg3: memref<32x8xf32, #tpu.memory_space<vmem>>, %arg4: memref<32x64xf32, #tpu.memory_space<vmem>>, %arg5: memref<1x64xf32, #tpu.memory_space<vmem>>, %arg6: memref<64x32xf32, #tpu.memory_space<vmem>>, %arg7: memref<1x32xf32, #tpu.memory_space<vmem>>, %arg8: memref<32x128xf32, #tpu.memory_space<vmem>>, %arg9: memref<1x128xf32, #tpu.memory_space<vmem>>, %arg10: memref<8x32xf32, #tpu.memory_space<vmem>>, %arg11: memref<4x32xf32, #tpu.memory_space<vmem>>, %arg12: memref<1x32xf32, #tpu.memory_space<vmem>>, %arg13: memref<32x64xf32, #tpu.memory_space<vmem>>, %arg14: memref<1x64xf32, #tpu.memory_space<vmem>>, %arg15: memref<64x128xf32, #tpu.memory_space<vmem>>, %arg16: memref<1x128xf32, #tpu.memory_space<vmem>>, %arg17: memref<32x128xbf16, #tpu.memory_space<vmem>>) attributes {dimension_semantics = [#tpu.dimension_semantics<parallel>], iteration_bounds = array<i64: 2>, scalar_prefetch = 0 : i64, scratch_operands = 0 : i64, tpu.core_type = #tpu.core_type<tc>, window_params = [{transform_indices = @transform_0, window_bounds = array<i64: 32, 32>}, {transform_indices = @transform_1, window_bounds = array<i64: 32, 4>}, {transform_indices = @transform_2, window_bounds = array<i64: 32, 8>}, {pipeline_mode = #tpu.pipeline_mode<synchronous>, transform_indices = @transform_3, window_bounds = array<i64: 32, 64>}, {pipeline_mode = #tpu.pipeline_mode<synchronous>, transform_indices = @transform_4, window_bounds = array<i64: 1, 64>}, {pipeline_mode = #tpu.pipeline_mode<synchronous>, transform_indices = @transform_5, window_bounds = array<i64: 64, 32>}, {pipeline_mode = #tpu.pipeline_mode<synchronous>, transform_indices = @transform_6, window_bounds = array<i64: 1, 32>}, {pipeline_mode = #tpu.pipeline_mode<synchronous>, transform_indices = @transform_7, window_bounds = array<i64: 32, 128>}, {pipeline_mode = #tpu.pipeline_mode<synchronous>, transform_indices = @transform_8, window_bounds = array<i64: 1, 128>}, {pipeline_mode = #tpu.pipeline_mode<synchronous>, transform_indices = @transform_9, window_bounds = array<i64: 8, 32>}, {pipeline_mode = #tpu.pipeline_mode<synchronous>, transform_indices = @transform_10, window_bounds = array<i64: 4, 32>}, {pipeline_mode = #tpu.pipeline_mode<synchronous>, transform_indices = @transform_11, window_bounds = array<i64: 1, 32>}, {pipeline_mode = #tpu.pipeline_mode<synchronous>, transform_indices = @transform_12, window_bounds = array<i64: 32, 64>}, {pipeline_mode = #tpu.pipeline_mode<synchronous>, transform_indices = @transform_13, window_bounds = array<i64: 1, 64>}, {pipeline_mode = #tpu.pipeline_mode<synchronous>, transform_indices = @transform_14, window_bounds = array<i64: 64, 128>}, {pipeline_mode = #tpu.pipeline_mode<synchronous>, transform_indices = @transform_15, window_bounds = array<i64: 1, 128>}, {transform_indices = @transform_16, window_bounds = array<i64: 32, 128>}]} {
    %c0 = arith.constant 0 : index
    %c0_0 = arith.constant 0 : index
    %0 = vector.load %arg1[%c0, %c0_0] : memref<32x32xf32, #tpu.memory_space<vmem>>, vector<32x32xf32>
    %c0_1 = arith.constant 0 : index
    %c0_2 = arith.constant 0 : index
    %1 = vector.load %arg4[%c0_1, %c0_2] : memref<32x64xf32, #tpu.memory_space<vmem>>, vector<32x64xf32>
    %cst = arith.constant dense<0.000000e+00> : vector<32x64xf32>
    %2 = tpu.matmul %0, %1, %cst {dimension_numbers = #tpu.dot_dimension_numbers<[1], [0], [0], [1], [0, 0, 1, 1], [], []>} : vector<32x32xf32>, vector<32x64xf32>, vector<32x64xf32> -> vector<32x64xf32>
    %c0_3 = arith.constant 0 : index
    %c0_4 = arith.constant 0 : index
    %3 = vector.load %arg5[%c0_3, %c0_4] : memref<1x64xf32, #tpu.memory_space<vmem>>, vector<1x64xf32>
    %4 = vector.broadcast %3 : vector<1x64xf32> to vector<32x64xf32>
    %5 = arith.addf %2, %4 : vector<32x64xf32>
    %cst_5 = arith.constant 0.000000e+00 : f32
    %6 = vector.broadcast %cst_5 : f32 to vector<32x64xf32>
    %7 = arith.maximumf %5, %6 : vector<32x64xf32>
    %c0_6 = arith.constant 0 : index
    %c0_7 = arith.constant 0 : index
    %8 = vector.load %arg6[%c0_6, %c0_7] : memref<64x32xf32, #tpu.memory_space<vmem>>, vector<64x32xf32>
    %cst_8 = arith.constant dense<0.000000e+00> : vector<32x32xf32>
    %9 = tpu.matmul %7, %8, %cst_8 {dimension_numbers = #tpu.dot_dimension_numbers<[1], [0], [0], [1], [0, 0, 1, 1], [], []>} : vector<32x64xf32>, vector<64x32xf32>, vector<32x32xf32> -> vector<32x32xf32>
    %c0_9 = arith.constant 0 : index
    %c0_10 = arith.constant 0 : index
    %10 = vector.load %arg7[%c0_9, %c0_10] : memref<1x32xf32, #tpu.memory_space<vmem>>, vector<1x32xf32>
    %11 = vector.broadcast %10 : vector<1x32xf32> to vector<32x32xf32>
    %12 = arith.addf %9, %11 : vector<32x32xf32>
    %cst_11 = arith.constant 0.000000e+00 : f32
    %13 = vector.broadcast %cst_11 : f32 to vector<32x32xf32>
    %14 = arith.maximumf %12, %13 : vector<32x32xf32>
    %c0_12 = arith.constant 0 : index
    %c0_13 = arith.constant 0 : index
    %15 = vector.load %arg8[%c0_12, %c0_13] : memref<32x128xf32, #tpu.memory_space<vmem>>, vector<32x128xf32>
    %cst_14 = arith.constant dense<0.000000e+00> : vector<32x128xf32>
    %16 = tpu.matmul %14, %15, %cst_14 {dimension_numbers = #tpu.dot_dimension_numbers<[1], [0], [0], [1], [0, 0, 1, 1], [], []>} : vector<32x32xf32>, vector<32x128xf32>, vector<32x128xf32> -> vector<32x128xf32>
    %c0_15 = arith.constant 0 : index
    %c0_16 = arith.constant 0 : index
    %17 = vector.load %arg9[%c0_15, %c0_16] : memref<1x128xf32, #tpu.memory_space<vmem>>, vector<1x128xf32>
    %18 = vector.broadcast %17 : vector<1x128xf32> to vector<32x128xf32>
    %19 = arith.addf %16, %18 : vector<32x128xf32>
    %20 = vector.extract_strided_slice %19 {offsets = [0, 0], sizes = [32, 8], strides = [1, 1]} : vector<32x128xf32> to vector<32x8xf32>
    %21 = vector.extract_strided_slice %19 {offsets = [0, 8], sizes = [32, 8], strides = [1, 1]} : vector<32x128xf32> to vector<32x8xf32>
    %c0_17 = arith.constant 0 : index
    %c0_18 = arith.constant 0 : index
    %22 = vector.load %arg3[%c0_17, %c0_18] : memref<32x8xf32, #tpu.memory_space<vmem>>, vector<32x8xf32>
    %cst_19 = arith.constant 5.000000e-01 : f32
    %23 = vector.broadcast %cst_19 : f32 to vector<32x8xf32>
    %24 = arith.mulf %23, %21 : vector<32x8xf32>
    %25 = math.exp %24 : vector<32x8xf32>
    %26 = arith.mulf %22, %25 : vector<32x8xf32>
    %27 = arith.addf %20, %26 : vector<32x8xf32>
    %c0_20 = arith.constant 0 : index
    %c0_21 = arith.constant 0 : index
    %28 = vector.load %arg10[%c0_20, %c0_21] : memref<8x32xf32, #tpu.memory_space<vmem>>, vector<8x32xf32>
    %cst_22 = arith.constant dense<0.000000e+00> : vector<32x32xf32>
    %29 = tpu.matmul %27, %28, %cst_22 {dimension_numbers = #tpu.dot_dimension_numbers<[1], [0], [0], [1], [0, 0, 1, 1], [], []>} : vector<32x8xf32>, vector<8x32xf32>, vector<32x32xf32> -> vector<32x32xf32>
    %c0_23 = arith.constant 0 : index
    %c0_24 = arith.constant 0 : index
    %30 = vector.load %arg2[%c0_23, %c0_24] : memref<32x4xf32, #tpu.memory_space<vmem>>, vector<32x4xf32>
    %c0_25 = arith.constant 0 : index
    %c0_26 = arith.constant 0 : index
    %31 = vector.load %arg11[%c0_25, %c0_26] : memref<4x32xf32, #tpu.memory_space<vmem>>, vector<4x32xf32>
    %cst_27 = arith.constant dense<0.000000e+00> : vector<32x32xf32>
    %32 = tpu.matmul %30, %31, %cst_27 {dimension_numbers = #tpu.dot_dimension_numbers<[1], [0], [0], [1], [0, 0, 1, 1], [], []>} : vector<32x4xf32>, vector<4x32xf32>, vector<32x32xf32> -> vector<32x32xf32>
    %33 = arith.addf %29, %32 : vector<32x32xf32>
    %c0_28 = arith.constant 0 : index
    %c0_29 = arith.constant 0 : index
    %34 = vector.load %arg12[%c0_28, %c0_29] : memref<1x32xf32, #tpu.memory_space<vmem>>, vector<1x32xf32>
    %35 = vector.broadcast %34 : vector<1x32xf32> to vector<32x32xf32>
    %36 = arith.addf %33, %35 : vector<32x32xf32>
    %cst_30 = arith.constant 0.000000e+00 : f32
    %37 = vector.broadcast %cst_30 : f32 to vector<32x32xf32>
    %38 = arith.maximumf %36, %37 : vector<32x32xf32>
    %c0_31 = arith.constant 0 : index
    %c0_32 = arith.constant 0 : index
    %39 = vector.load %arg13[%c0_31, %c0_32] : memref<32x64xf32, #tpu.memory_space<vmem>>, vector<32x64xf32>
    %cst_33 = arith.constant dense<0.000000e+00> : vector<32x64xf32>
    %40 = tpu.matmul %38, %39, %cst_33 {dimension_numbers = #tpu.dot_dimension_numbers<[1], [0], [0], [1], [0, 0, 1, 1], [], []>} : vector<32x32xf32>, vector<32x64xf32>, vector<32x64xf32> -> vector<32x64xf32>
    %c0_34 = arith.constant 0 : index
    %c0_35 = arith.constant 0 : index
    %41 = vector.load %arg14[%c0_34, %c0_35] : memref<1x64xf32, #tpu.memory_space<vmem>>, vector<1x64xf32>
    %42 = vector.broadcast %41 : vector<1x64xf32> to vector<32x64xf32>
    %43 = arith.addf %40, %42 : vector<32x64xf32>
    %cst_36 = arith.constant 0.000000e+00 : f32
    %44 = vector.broadcast %cst_36 : f32 to vector<32x64xf32>
    %45 = arith.maximumf %43, %44 : vector<32x64xf32>
    %c0_37 = arith.constant 0 : index
    %c0_38 = arith.constant 0 : index
    %46 = vector.load %arg15[%c0_37, %c0_38] : memref<64x128xf32, #tpu.memory_space<vmem>>, vector<64x128xf32>
    %cst_39 = arith.constant dense<0.000000e+00> : vector<32x128xf32>
    %47 = tpu.matmul %45, %46, %cst_39 {dimension_numbers = #tpu.dot_dimension_numbers<[1], [0], [0], [1], [0, 0, 1, 1], [], []>} : vector<32x64xf32>, vector<64x128xf32>, vector<32x128xf32> -> vector<32x128xf32>
    %c0_40 = arith.constant 0 : index
    %c0_41 = arith.constant 0 : index
    %48 = vector.load %arg16[%c0_40, %c0_41] : memref<1x128xf32, #tpu.memory_space<vmem>>, vector<1x128xf32>
    %49 = vector.broadcast %48 : vector<1x128xf32> to vector<32x128xf32>
    %50 = arith.addf %47, %49 : vector<32x128xf32>
    %51 = arith.addf %19, %50 : vector<32x128xf32>
    %52 = arith.truncf %51 : vector<32x128xf32> to vector<32x128xbf16>
    %c0_42 = arith.constant 0 : index
    %c0_43 = arith.constant 0 : index
    %53 = vector.load %arg17[%c0_42, %c0_43] : memref<32x128xbf16, #tpu.memory_space<vmem>>, vector<32x128xbf16>
    tpu.vector_store %arg17[%c0_42, %c0_43], %52 {strides = array<i32>} : memref<32x128xbf16, #tpu.memory_space<vmem>>, vector<32x128xbf16>,
    return
  }
  func.func @transform_0(%arg0: i32) -> (i32, i32) {
    %c0_i32 = arith.constant 0 : i32
    %c0_i32_0 = arith.constant 0 : i32
    return %arg0, %c0_i32 : i32, i32
  }
  func.func @transform_1(%arg0: i32) -> (i32, i32) {
    %c0_i32 = arith.constant 0 : i32
    %c0_i32_0 = arith.constant 0 : i32
    return %arg0, %c0_i32 : i32, i32
  }
  func.func @transform_2(%arg0: i32) -> (i32, i32) {
    %c0_i32 = arith.constant 0 : i32
    %c0_i32_0 = arith.constant 0 : i32
    return %arg0, %c0_i32 : i32, i32
  }
  func.func @transform_3(%arg0: i32) -> (i32, i32) {
    %c0_i32 = arith.constant 0 : i32
    %c0_i32_0 = arith.constant 0 : i32
    %c0_i32_1 = arith.constant 0 : i32
    return %c0_i32, %c0_i32_0 : i32, i32
  }
  func.func @transform_4(%arg0: i32) -> (i32, i32) {
    %c0_i32 = arith.constant 0 : i32
    %c0_i32_0 = arith.constant 0 : i32
    %c0_i32_1 = arith.constant 0 : i32
    return %c0_i32, %c0_i32_0 : i32, i32
  }
  func.func @transform_5(%arg0: i32) -> (i32, i32) {
    %c0_i32 = arith.constant 0 : i32
    %c0_i32_0 = arith.constant 0 : i32
    %c0_i32_1 = arith.constant 0 : i32
    return %c0_i32, %c0_i32_0 : i32, i32
  }
  func.func @transform_6(%arg0: i32) -> (i32, i32) {
    %c0_i32 = arith.constant 0 : i32
    %c0_i32_0 = arith.constant 0 : i32
    %c0_i32_1 = arith.constant 0 : i32
    return %c0_i32, %c0_i32_0 : i32, i32
  }
  func.func @transform_7(%arg0: i32) -> (i32, i32) {
    %c0_i32 = arith.constant 0 : i32
    %c0_i32_0 = arith.constant 0 : i32
    %c0_i32_1 = arith.constant 0 : i32
    return %c0_i32, %c0_i32_0 : i32, i32
  }
  func.func @transform_8(%arg0: i32) -> (i32, i32) {
    %c0_i32 = arith.constant 0 : i32
    %c0_i32_0 = arith.constant 0 : i32
    %c0_i32_1 = arith.constant 0 : i32
    return %c0_i32, %c0_i32_0 : i32, i32
  }
  func.func @transform_9(%arg0: i32) -> (i32, i32) {
    %c0_i32 = arith.constant 0 : i32
    %c0_i32_0 = arith.constant 0 : i32
    %c0_i32_1 = arith.constant 0 : i32
    return %c0_i32, %c0_i32_0 : i32, i32
  }
  func.func @transform_10(%arg0: i32) -> (i32, i32) {
    %c0_i32 = arith.constant 0 : i32
    %c0_i32_0 = arith.constant 0 : i32
    %c0_i32_1 = arith.constant 0 : i32
    return %c0_i32, %c0_i32_0 : i32, i32
  }
  func.func @transform_11(%arg0: i32) -> (i32, i32) {
    %c0_i32 = arith.constant 0 : i32
    %c0_i32_0 = arith.constant 0 : i32
    %c0_i32_1 = arith.constant 0 : i32
    return %c0_i32, %c0_i32_0 : i32, i32
  }
  func.func @transform_12(%arg0: i32) -> (i32, i32) {
    %c0_i32 = arith.constant 0 : i32
    %c0_i32_0 = arith.constant 0 : i32
    %c0_i32_1 = arith.constant 0 : i32
    return %c0_i32, %c0_i32_0 : i32, i32
  }
  func.func @transform_13(%arg0: i32) -> (i32, i32) {
    %c0_i32 = arith.constant 0 : i32
    %c0_i32_0 = arith.constant 0 : i32
    %c0_i32_1 = arith.constant 0 : i32
    return %c0_i32, %c0_i32_0 : i32, i32
  }
  func.func @transform_14(%arg0: i32) -> (i32, i32) {
    %c0_i32 = arith.constant 0 : i32
    %c0_i32_0 = arith.constant 0 : i32
    %c0_i32_1 = arith.constant 0 : i32
    return %c0_i32, %c0_i32_0 : i32, i32
  }
  func.func @transform_15(%arg0: i32) -> (i32, i32) {
    %c0_i32 = arith.constant 0 : i32
    %c0_i32_0 = arith.constant 0 : i32
    %c0_i32_1 = arith.constant 0 : i32
    return %c0_i32, %c0_i32_0 : i32, i32
  }
  func.func @transform_16(%arg0: i32) -> (i32, i32) {
    %c0_i32 = arith.constant 0 : i32
    %c0_i32_0 = arith.constant 0 : i32
    return %arg0, %c0_i32 : i32, i32
  }
}

</mosaic_0001>

<bundles_post_ra>
// kernel: tpu_custom_call.1
= control target key start
LH: loop header
LB: loop body
LE: loop exit
PB: predicated region body
PF: predicated region fallthrough
CT: control target
= control target key end

     0   :  { %s2277_s0 = inlined_call_operand.vmem [shape: f32[64,32], index: 0, kind: input, shape index: {}]   ;;  %s2278_s1 = inlined_call_operand.vmem [shape: f32[64,4], index: 1, kind: input, shape index: {}]   ;;  %s2279_s2 = inlined_call_operand.vmem [shape: f32[64,8], index: 2, kind: input, shape index: {}]   ;;  %s2280_s3 = inlined_call_operand.vmem [shape: f32[32,64], index: 3, kind: input, shape index: {}]   ;;  %s2281_s4 = inlined_call_operand.vmem [shape: f32[1,64], index: 4, kind: input, shape index: {}]   ;;  %s2282_s5 = inlined_call_operand.vmem [shape: f32[64,32], index: 5, kind: input, shape index: {}]   ;;  %s2283_s6 = inlined_call_operand.vmem [shape: f32[1,32], index: 6, kind: input, shape index: {}]   ;;  %s2284_s7 = inlined_call_operand.vmem [shape: f32[32,128], index: 7, kind: input, shape index: {}]   ;;  %s2285_s8 = inlined_call_operand.vmem [shape: f32[1,128], index: 8, kind: input, shape index: {}]   ;;  %s2286_s9 = inlined_call_operand.vmem [shape: f32[8,32], index: 9, kind: input, shape index: {}]   ;;  %s2287_s10 = inlined_call_operand.vmem [shape: f32[4,32], index: 10, kind: input, shape index: {}]   ;;  %s2288_s11 = inlined_call_operand.vmem [shape: f32[1,32], index: 11, kind: input, shape index: {}]   ;;  %s2289_s12 = inlined_call_operand.vmem [shape: f32[32,64], index: 12, kind: input, shape index: {}]   ;;  %s2290_s13 = inlined_call_operand.vmem [shape: f32[1,64], index: 13, kind: input, shape index: {}]   ;;  %s2291_s14 = inlined_call_operand.vmem [shape: f32[64,128], index: 14, kind: input, shape index: {}]   ;;  %s2292_s15 = inlined_call_operand.vmem [shape: f32[1,128], index: 15, kind: input, shape index: {}]   ;;  %s2293_s16 = inlined_call_operand.hbm [shape: bf16[64,128], index: 16, kind: output, shape index: {}]  }
   0x1   :  { %2299 = sst [smem:[#allocation10_spill]] %s2277_s0 }
   0x2   :  { %21 = vsyncpa [#allocation3], 0 }
   0x3   :  { %23 = vsyncpa [#allocation3 + $0x1], 0  ;;  %s2012_s21 = smov 0   ;;  %s2014_s22 = smov 0  }
   0x4   :  { %s2016_s23 = smov 0   ;;  %s2018_s24 = smov 0  }
   0x5 LB: > { %2300 = sst [smem:[#allocation5_spill]] %s1909_s21  ;;  %s2033_s25 = sadd.s32 4294967295, %s1921_s24   ;;  %s1921_s24 = sphi %s2018_s24, %s2310_s24   ;;  %s1917_s23 = sphi %s2016_s23, %s2312_s23   ;;  %s1913_s22 = sphi %s2014_s22, %s2314_s22   ;;  %s1909_s21 = sphi %s2012_s21, %s2313_s21  }
   0x6   : > { %2301 = sst [smem:[#allocation6_spill]] %s1917_s23  ;;  %s1518_s26 = sadd.s32 4294967294, %s1921_s24  }
   0x7   : > { %s2037_s27 = sadd.s32 1, %s1921_s24   ;;  %s387_s28 = sadd.s32 1, %s1917_s23 }
   0x8   : > { %2302 = sst [smem:[#allocation7_spill]] %s2037_s27  ;;  %s384_s29 = ssub.s32 %s1921_s24, %s2037_s27 }
   0x9   : > { %p397_p0 = scmp.ne.s32.totalorder %s1917_s23, %s1913_s22  ;;  %p385_p1 = scmp.eq.s32.totalorder %s384_s29, 0 }
   0xa   : > { %p398_p2 = scmp.eq.s32.totalorder %s2033_s25, 1  ;;  %p403_p3 = scmp.ne.s32.totalorder %s1913_s22, %s1909_s21 }
   0xb   : > { %p404_p4 = scmp.eq.s32.totalorder %s1518_s26, 1  ;;  %p1521_p7 = scmp.ge.s32.totalorder %s1921_s24, 1 }
   0xc   : > { %s2048_s30 = scalar_select %p385_p1, %s1917_s23, %s387_s28  }
   0xd   : > { %p2050_p5 = por %p398_p2, %p397_p0  ;;  %p2054_p6 = por %p404_p4, %p403_p3 }
   0xe   : > { %2303 = sst [smem:[#allocation8_spill]] %s2048_s30  ;;  %p488_p8 = scmp.lt.s32.totalorder %s1921_s24, 3 }
   0xf   : > { %s2305_s17 = scalar_select %p2054_p6, 1, 0 }
  0x10   : > { %p489_p9 = pnand %p1521_p7, %p488_p8 }
  0x11   : > { %2306 = sst [smem:[#allocation9_spill]] %s2305_s17  ;;  %v571_v0 = vld [vmem:[%s2280_s3] sm:$0xff] (!%p489_p9)  ;;  %v572_v1 = vld [vmem:[%s2280_s3 + $0x8] sm:$0xff] (!%p489_p9)  ;;  %v573_v2 = vld [vmem:[%s2280_s3 + $0x10] sm:$0xff] (!%p489_p9)  ;;  %s1523_s30 = sshll.u32 (!%p489_p9), %s2033_s25, 2  ;;  %vm582_vm0 = vcmask (!%p489_p9), 261120  }
  0x12   : > { %492 = sbr.rel (%p489_p9) target bundleno = 1493 (0x5d5), region = 84  ;;  %v1749_v3 = vpack.c.bf16 (!%p489_p9), %v572_v1, %v571_v0  ;;  %v574_v4 = vld [vmem:[%s2280_s3 + $0x18] sm:$0xff] (!%p489_p9)  ;;  %p549_p10 = scmp.lt.s32.totalorder (!%p489_p9), %s1523_s30, 7  ;;  %v684_v5 = vld [vmem:[%s2282_s5] sm:$0xff] (!%p489_p9)  ;;  %v685_v6 = vld [vmem:[%s2282_s5 + $0x8] sm:$0xff] (!%p489_p9)  ;;  %vm699_vm1 = vcmask (!%p489_p9), 523264  }
  0x13   : > { %v1753_v7 = vpack.c.bf16 (!%p489_p9), %v574_v4, %v573_v2  ;;  %v1757_v8 = vpack.c.bf16 (!%p489_p9), %v685_v6, %v684_v5  ;;  %v686_v9 = vld [vmem:[%s2282_s5 + $0x10] sm:$0xff] (!%p489_p9)  ;;  %v687_v10 = vld [vmem:[%s2282_s5 + $0x18] sm:$0xff] (!%p489_p9)  ;;  %v688_v12 = vld [vmem:[%s2282_s5 + $0x20] sm:$0xff] (!%p489_p9)  ;;  %s2307_s26 = sld [smem:[#allocation10_spill]] (!%p489_p9)  ;;  %vm968_vm2 = vcmask (!%p489_p9), 1043456   ;;  %vm955_vm3 = vcmask (!%p489_p9), 31744  }
  0x14   : > { %1750 = vmatprep.subr.bf16.mxu0 (!%p489_p9), %v1749_v3  ;;  %v1761_v11 = vpack.c.bf16 (!%p489_p9), %v687_v10, %v686_v9  ;;  %v689_v13 = vld [vmem:[%s2282_s5 + $0x28] sm:$0xff] (!%p489_p9)  ;;  %v690_v19 = vld [vmem:[%s2282_s5 + $0x30] sm:$0xff] (!%p489_p9)  ;;  %v691_v20 = vld [vmem:[%s2282_s5 + $0x38] sm:$0xff] (!%p489_p9)  ;;  %vm1057_vm4 = vcmask (!%p489_p9), 64512   ;;  %s545_s19 = sand.u32 (!%p489_p9), 1, %s1913_s22   ;;  %s1924_s27 = smov (!%p489_p9), [#allocation2]  }
  0x15   : > { %1752 = vmatpush3.bf16.msra.mxu0 (!%p489_p9), %v1749_v3  ;;  %1758 = vmatprep.subr.bf16.mxu1 (!%p489_p9), %v1757_v8  ;;  %v1765_v14 = vpack.c.bf16 (!%p489_p9), %v689_v13, %v688_v12  ;;  %v1769_v21 = vpack.c.bf16 (!%p489_p9), %v691_v20, %v690_v19  ;;  %v801_v22 = vld [vmem:[%s2284_s7] sm:$0xff] (!%p489_p9)  ;;  %v802_v23 = vld [vmem:[%s2284_s7 + $0x8] sm:$0xff] (!%p489_p9)  ;;  %v803_v38 = vld [vmem:[%s2284_s7 + $0x10] sm:$0xff] (!%p489_p9)  ;;  %s1522_s20 = sshll.u32 (!%p489_p9), %s545_s19, 4  ;;  %s2236_s21 = scalar_lea.sflag (!%p489_p9), [#allocation3], %s545_s19 }
  0x16   : > { %1754 = vmatprep.subr.bf16.mxu0 (!%p489_p9), %v1753_v7  ;;  %1760 = vmatpush3.bf16.msra.mxu1 (!%p489_p9), %v1757_v8  ;;  %v1773_v24 = vpack.c.bf16 (!%p489_p9), %v802_v23, %v801_v22  ;;  %v1529_v25 = vld [vmem:[%s2281_s4] ss:$0 sm:$0xff] (!%p489_p9)  ;;  %v804_v39 = vld [vmem:[%s2284_s7 + $0x18] sm:$0xff] (!%p489_p9)  ;;  %s1863_s17 = sshll.u32 (!%p489_p9), %s1924_s27, 4  ;;  %s1864_s17 = int_to_ptr.vmem [resolvable:$false] %s1863_s17 }
  0x17   : > { %1762 = vmatprep.subr.bf16.mxu1 (!%p489_p9), %v1761_v11  ;;  %v1777_v40 = vpack.c.bf16 (!%p489_p9), %v804_v39, %v803_v38  ;;  %v1534_v41 = vld [vmem:[%s2283_s6] ss:$0 sm:$0xff] (!%p489_p9) }
  0x18   : > { %v954_v54 = vld [vmem:[%s2287_s10] sm:$0xf] (!%p489_p9) }
  0x19   : > { %s2316_s30 = smov (!%p549_p10, %s1523_s30), 7  ;;  %1756 = vmatpush3.bf16.msra.mxu0 %v1753_v7  ;;  %v949_v55 = vld [vmem:[%s2286_s9] sm:$0xff] }
  0x1a   : > { %s2091_s18 = sshll.u32 %s2316_s30, 3  ;;  %1764 = vmatpush3.bf16.msra.mxu1 %v1761_v11  ;;  %1774 = vmatprep.subr.bf16.mxu0 %v1773_v24  ;;  %v1539_v58 = vld [vmem:[%s2285_s8] ss:$0 sm:$0xff] }
  0x1b   : > { %s552_s28 = scalar_lea.vmem %s2307_s26, %s2091_s18  ;;  %1766 = vmatprep.subr.bf16.mxu1 %v1765_v14  ;;  %s558_s30 = scalar_lea.vmem %s2278_s1, %s2091_s18  ;;  %v1282_v39 = vld [vmem:[%s2291_s14] sm:$0xff] }
  0x1c   : > { %v567_v15 = vld [vmem:[%s552_s28] sm:$0xff]  ;;  %v568_v16 = vld [vmem:[%s552_s28 + $0x8] sm:$0xff]  ;;  %v569_v17 = vld [vmem:[%s552_s28 + $0x10] sm:$0xff]  ;;  %s564_s23 = scalar_lea.vmem %s2279_s2, %s2091_s18  ;;  %s547_s26 = scalar_lea.vmem [#allocation2], %s1522_s20 }
  0x1d   : > { %1655 = vmatprep.mubr.msk.f32.mxu0 %vm582_vm0, %v567_v15  ;;  %v570_v18 = vld [vmem:[%s552_s28 + $0x18] sm:$0xff]  ;;  %v950_v56 = vld [vmem:[%s558_s30] sm:$0xff]  ;;  %v951_v57 = vld [vmem:[%s558_s30 + $0x8] sm:$0xff]  ;;  %s1923_s28 = smov 120   ;;  %s1865_s20 = scalar_lea.vmem %s1864_s17, 512 }
  0x1e   : > { %1656 = vmatmul.mubr.msk.f32.vlgmr.msra.gmra.mrb[0].mxu0 %vm582_vm0, %v568_v16  ;;  %1768 = vmatpush3.bf16.msra.mxu1 %v1765_v14  ;;  %v952_v7 = vld [vmem:[%s558_s30 + $0x10] sm:$0xff]  ;;  %v953_v10 = vld [vmem:[%s558_s30 + $0x18] sm:$0xff]  ;;  %v1170_v14 = vld [vmem:[%s2289_s12] sm:$0xff]  ;;  %s1577_s30 = sshll.u32 %s2033_s25, 8 }
  0x1f   : > { %1658 = vmatprep.mubr.msk.f32.mxu0 %vm582_vm0, %v569_v17  ;;  %1770 = vmatprep.subr.bf16.mxu1 %v1769_v21  ;;  %v1171_v15 = vld [vmem:[%s2289_s12 + $0x8] sm:$0xff]  ;;  %v909_v20 = vld [vmem:[%s564_s23] sm:$0xff]  ;;  %v911_v23 = vld [vmem:[%s564_s23 + $0x10] sm:$0xff]  ;;  %s2234_s18 = scalar_lea.hbm %s2293_s16, %s1577_s30 }
  0x20   : > { %1776 = vmatpush3.bf16.msra.mxu0 %v1773_v24  ;;  %v1781_v16 = vpack.c.bf16 %v1171_v15, %v1170_v14  ;;  %v910_v24 = vld [vmem:[%s564_s23 + $0x8] sm:$0xff] }
  0x21   : > { %1778 = vmatprep.subr.bf16.mxu0 %v1777_v40 }
  0x22   : > { %1659 = vmatmul.mubr.msk.f32.gmra.mrb[2].mxu0 %vm582_vm0, %v570_v18  ;;  %1772 = vmatpush3.bf16.msra.mxu1 %v1769_v21 }
  0x23   : > { %1782 = vmatprep.subr.bf16.mxu1 %v1781_v16 }
  0x24   : > { %1780 = vmatpush3.bf16.msra.mxu0 %v1777_v40  ;;  %v1283_v40 = vld [vmem:[%s2291_s14 + $0x8] sm:$0xff] }
  0x25   : > { %1697 = vmatprep.subr.msk.mxu0 %vm968_vm2, %v954_v54 }
  0xf1   : > { %v1657_v26 = vpop.f32.mrb[0].mxu0 }
  0xf2   : > { %v667_v27 = vadd.f32 %v1657_v26, %v1529_v25  ;;  %v661_v28 = vpop.f32.mrb[1].mxu0 }
  0xf3   : > { %v662_v29 = vadd.f32 %v1529_v25, %v661_v28 }
  0xf4   : > { %v681_v32 = vmax.f32 %v667_v27, 0.0 }
  0xf5   : > { %v680_v30 = vmax.f32 %v662_v29, 0.0  ;;  %v1660_v31 = vpop.f32.mrb[2].mxu0 }
  0xf6   : > { %v677_v33 = vadd.f32 %v1660_v31, %v1529_v25  ;;  %v671_v34 = vpop.f32.mrb[3].mxu0 }
  0xf7   : > { %v672_v35 = vadd.f32 %v1529_v25, %v671_v34  ;;  %1677 = vmatprep.mubr.msk.f32.mxu1 %vm699_vm1, %v680_v30  ;;  %v912_v30 = vld [vmem:[%s564_s23 + $0x18] sm:$0xff] }
  0xf8   : > { %1678 = vmatmul.mubr.msk.f32.vlgmr.msra.gmra.mrb[0].mxu1 %vm699_vm1, %v681_v32  ;;  %v683_v37 = vmax.f32 %v677_v33, 0.0 }
  0xf9   : > { %v682_v36 = vmax.f32 %v672_v35, 0.0  ;;  %1784 = vmatpush3.bf16.msra.mxu1 %v1781_v16 }
  0xfb   : > { %1680 = vmatprep.mubr.msk.f32.mxu1 %vm699_vm1, %v682_v36  ;;  %v1172_v36 = vld [vmem:[%s2289_s12 + $0x10] sm:$0xff] }
  0xfc   : > { %1681 = vmatmul.mubr.msk.f32.gmra.mrb[2].mxu1 %vm699_vm1, %v683_v37  ;;  %v1173_v37 = vld [vmem:[%s2289_s12 + $0x18] sm:$0xff] }
  0xfd   : > { %v1785_v38 = vpack.c.bf16 %v1173_v37, %v1172_v36 }
  0xff   : > { %1786 = vmatprep.subr.bf16.mxu1 %v1785_v38 }
 0x100   : > { %1788 = vmatpush3.bf16.msra.mxu1 %v1785_v38 }
 0x1cb   : > { %v1679_v42 = vpop.f32.mrb[0].mxu1 }
 0x1cc   : > { %v784_v43 = vadd.f32 %v1679_v42, %v1534_v41  ;;  %v778_v44 = vpop.f32.mrb[1].mxu1  ;;  %v1553_v42 = vld [vmem:[%s2288_s11] ss:$0 sm:$0xff] }
 0x1cd   : > { %v779_v45 = vadd.f32 %v1534_v41, %v778_v44 }
 0x1ce   : > { %v798_v48 = vmax.f32 %v784_v43, 0.0 }
 0x1cf   : > { %v797_v46 = vmax.f32 %v779_v45, 0.0  ;;  %v1682_v47 = vpop.f32.mrb[2].mxu1 }
 0x1d0   : > { %v794_v49 = vadd.f32 %v1682_v47, %v1534_v41  ;;  %v788_v50 = vpop.f32.mrb[3].mxu1  ;;  %v1284_v47 = vld [vmem:[%s2291_s14 + $0x10] sm:$0xff] }
 0x1d1   : > { %v789_v51 = vadd.f32 %v1534_v41, %v788_v50  ;;  %1691 = vmatprep.mubr.msk.f32.mxu0 %vm582_vm0, %v797_v46  ;;  %v1789_v41 = vpack.c.bf16 %v1283_v40, %v1282_v39 }
 0x1d2   : > { %1692 = vmatmul.mubr.msk.f32.vlgmr.msra.gmra.mrb[4].mxu0 %vm582_vm0, %v798_v48  ;;  %v800_v53 = vmax.f32 %v794_v49, 0.0  ;;  %v1285_v48 = vld [vmem:[%s2291_s14 + $0x18] sm:$0xff] }
 0x1d3   : > { %v799_v52 = vmax.f32 %v789_v51, 0.0  ;;  %1698 = vmatpush3.msk.msra.mxu0 %vm968_vm2, %v954_v54  ;;  %1790 = vmatprep.subr.bf16.mxu1 %v1789_v41  ;;  %v1793_v54 = vpack.c.bf16 %v1285_v48, %v1284_v47 }
 0x1d4   : > { %1705 = vmatprep.subr.mxu0 %v949_v55 }
 0x1d5   : > { %1694 = vmatprep.mubr.msk.f32.mxu0 %vm582_vm0, %v799_v52 }
 0x1d6   : > { %1695 = vmatmul.mubr.msk.f32.gmra.mrb[6].mxu0 %vm582_vm0, %v800_v53 }
 0x1d7   : > { %1699 = vmatprep.mubr.msk.f32.mxu0 %vm955_vm3, %v950_v56  ;;  %v1286_v56 = vld [vmem:[%s2291_s14 + $0x20] sm:$0xff] }
 0x1da   : > { %1700 = vmatmul.mubr.msk.f32.vlgmr.msra.gmra.mrb[8].mxu0 %vm955_vm3, %v951_v57  ;;  %v1287_v57 = vld [vmem:[%s2291_s14 + $0x28] sm:$0xff] }
 0x1db   : > { %1706 = vmatpush3.msra.mxu0 %v949_v55  ;;  %1702 = vmatprep.mubr.msk.f32.mxu0 %vm955_vm3, %v952_v7 }
 0x1de   : > { %1703 = vmatmul.mubr.msk.f32.gmra.mrb[10].mxu0 %vm955_vm3, %v953_v10 }
 0x2a5   : > { %v1693_v59 = vpop.f32.mrb[4].mxu0 }
 0x2a6   : > { %v2148_v60 = vadd.f32 %v1693_v59, %v1539_v58  ;;  %v890_v61 = vpop.f32.mrb[5].mxu0 }
 0x2a7   : > { %v2150_v62 = vadd.f32 %v1539_v58, %v890_v61  ;;  %v1797_v61 = vpack.c.bf16 %v1287_v57, %v1286_v56 }
 0x2a8   : > { %v914_v63 = vmul.f32 0.5, %v2148_v60 }
 0x2a9   : > { %v913_v0 = vmul.f32 0.5, %v2150_v62  ;;  %v1696_v1 = vpop.f32.mrb[6].mxu0 }
 0x2aa   : > { %v2154_v2 = vadd.f32 %v1696_v1, %v1539_v58  ;;  %v900_v3 = vpop.f32.mrb[7].mxu0  ;;  %v919_v6 = vmul.f32 1.442695, %v914_v63  ;;  %v1288_v63 = vld [vmem:[%s2291_s14 + $0x30] sm:$0xff] }
 0x2ab   : > { %v917_v4 = vmul.f32 1.442695, %v913_v0  ;;  %v2156_v5 = vadd.f32 %v1539_v58, %v900_v3  ;;  %v1289_v0 = vld [vmem:[%s2291_s14 + $0x38] sm:$0xff]  ;;  %v1554_v3 = vld [vmem:[%s2290_s13] ss:$0 sm:$0xff] }
 0x2ac   : > { %v916_v8 = vmul.f32 0.5, %v2154_v2  ;;  %v1801_v1 = vpack.c.bf16 %v1289_v0, %v1288_v63 }
 0x2ad   : > { %1851 = vpow2.f32 %v917_v4  ;;  %v915_v9 = vmul.f32 0.5, %v2156_v5 }
 0x2ae   : > { %1853 = vpow2.f32 %v919_v6  ;;  %v923_v12 = vmul.f32 1.442695, %v916_v8 }
 0x2af   : > { %v921_v11 = vmul.f32 1.442695, %v915_v9 }
 0x2b1   : > { %1855 = vpow2.f32 %v921_v11 }
 0x2b2   : > { %1857 = vpow2.f32 %v923_v12 }
 0x2b7   : > { %v1852_v13 = vpop.eup %1851 }
 0x2b8   : > { %929 = vrot.lane.b32.xlu0 %v1852_v13, %s1923_s28  ;;  %v1854_v17 = vpop.eup %1853 }
 0x2bb   : > { %v1856_v18 = vpop.eup %1855 }
 0x2bc   : > { %933 = vrot.lane.b32.xlu1 %v1856_v18, %s1923_s28  ;;  %931 = vrot.lane.b32.xlu0 %v1854_v17, %s1923_s28  ;;  %v1858_v19 = vpop.eup %1857  ;;  %v1559_v17 = vld [vmem:[%s2292_s15] ss:$0 sm:$0xff] }
 0x2c0   : > { %935 = vrot.lane.b32.xlu1 %v1858_v19, %s1923_s28  ;;  %s1432_s28 = sshll.u32 %s547_s26, 4  ;;  %s2229_s28 = int_to_ptr.vmem [resolvable:$true] %s1432_s28 }
 0x2c1   : > { %s1859_s25 = scalar_lea.vmem %s2229_s28, 256  ;;  %p1866_p0 = scmp.lt.s32.totalorder %s2229_s28, %s1864_s17 }
 0x2c2   : > { %p1860_p11 = scmp.ne.s32.totalorder %s2229_s28, %s1859_s25  ;;  %p1867_p1 = scmp.lt.s32.totalorder %s1865_s20, %s1859_s25 }
 0x2c4   : > { %p1861_p12 = pnand %p1860_p11, %p2050_p5  ;;  %p1868_p2 = por %p1867_p1, %p1866_p0 }
 0x2c6   : > { %p1862_p13 = pneg %p1861_p12 }
 0x2c8   : > { %p1869_p3 = pnand %p1868_p2, %p1862_p13 }
 0x32a   : > { %v930_v21 = vpop.permute.xlu0 %929 }
 0x32b   : > { %v941_v22 = vmul.f32 %v930_v21, %v909_v20 }
 0x32d   : > { %v945_v25 = vadd.f32 %v941_v22, %v2150_v62 }
 0x32e   : > { %v934_v26 = vpop.permute.xlu1 %933  ;;  %v932_v27 = vpop.permute.xlu0 %931 }
 0x32f   : > { %v943_v28 = vmul.f32 %v934_v26, %v911_v23  ;;  %v942_v29 = vmul.f32 %v932_v27, %v910_v24  ;;  %1707 = vmatprep.mubr.msk.f32.mxu0 %vm1057_vm4, %v945_v25 }
 0x331   : > { %v947_v31 = vadd.f32 %v943_v28, %v2156_v5  ;;  %v946_v32 = vadd.f32 %v942_v29, %v2148_v60 }
 0x332   : > { %v936_v33 = vpop.permute.xlu1 %935 }
 0x333   : > { %v944_v34 = vmul.f32 %v936_v33, %v912_v30  ;;  %1708 = vmatmul.mubr.msk.f32.vlgmr.msra.gmra.mrb[8].mxu0 %vm1057_vm4, %v946_v32 }
 0x334   : > { %1710 = vmatprep.mubr.msk.f32.mxu0 %vm1057_vm4, %v947_v31 }
 0x335   : > { %v948_v35 = vadd.f32 %v944_v34, %v2154_v2 }
 0x337   : > { %1711 = vmatmul.mubr.msk.f32.gmra.mrb[10].mxu0 %vm1057_vm4, %v948_v35 }
 0x406   : > { %v1709_v43 = vpop.f32.mrb[8].mxu0 }
 0x407   : > { %v1163_v44 = vadd.f32 %v1709_v43, %v1553_v42  ;;  %v1136_v45 = vpop.f32.mrb[9].mxu0 }
 0x408   : > { %v1162_v46 = vadd.f32 %v1553_v42, %v1136_v45 }
 0x409   : > { %v1167_v51 = vmax.f32 %v1163_v44, 0.0 }
 0x40a   : > { %v1166_v49 = vmax.f32 %v1162_v46, 0.0  ;;  %v1712_v50 = vpop.f32.mrb[10].mxu0 }
 0x40b   : > { %v1165_v52 = vadd.f32 %v1712_v50, %v1553_v42  ;;  %v1146_v53 = vpop.f32.mrb[11].mxu0 }
 0x40c   : > { %v1164_v55 = vadd.f32 %v1553_v42, %v1146_v53  ;;  %1721 = vmatprep.mubr.msk.f32.mxu1 %vm582_vm0, %v1166_v49 }
 0x40d   : > { %1722 = vmatmul.mubr.msk.f32.vlgmr.msra.gmra.mrb[4].mxu1 %vm582_vm0, %v1167_v51  ;;  %v1169_v59 = vmax.f32 %v1165_v52, 0.0 }
 0x40e   : > { %v1168_v58 = vmax.f32 %v1164_v55, 0.0  ;;  %1792 = vmatpush3.bf16.msra.mxu1 %v1789_v41 }
 0x40f   : > { %1794 = vmatprep.subr.bf16.mxu1 %v1793_v54 }
 0x410   : > { %1724 = vmatprep.mubr.msk.f32.mxu1 %vm582_vm0, %v1168_v58 }
 0x411   : > { %1725 = vmatmul.mubr.msk.f32.gmra.mrb[6].mxu1 %vm582_vm0, %v1169_v59 }
 0x412   : > { %1796 = vmatpush3.bf16.msra.mxu1 %v1793_v54 }
 0x413   : > { %1798 = vmatprep.subr.bf16.mxu1 %v1797_v61 }
 0x416   : > { %1800 = vmatpush3.bf16.msra.mxu1 %v1797_v61 }
 0x417   : > { %1802 = vmatprep.subr.bf16.mxu1 %v1801_v1 }
 0x41a   : > { %1804 = vmatpush3.bf16.msra.mxu1 %v1801_v1 }
 0x4e0   : > { %v1723_v4 = vpop.f32.mrb[4].mxu1 }
 0x4e1   : > { %v1265_v6 = vadd.f32 %v1723_v4, %v1554_v3  ;;  %v1259_v7 = vpop.f32.mrb[5].mxu1 }
 0x4e2   : > { %v1260_v8 = vadd.f32 %v1554_v3, %v1259_v7 }
 0x4e3   : > { %v1279_v11 = vmax.f32 %v1265_v6, 0.0 }
 0x4e4   : > { %v1278_v9 = vmax.f32 %v1260_v8, 0.0  ;;  %v1726_v10 = vpop.f32.mrb[6].mxu1 }
 0x4e5   : > { %v1275_v12 = vadd.f32 %v1726_v10, %v1554_v3  ;;  %v1269_v13 = vpop.f32.mrb[7].mxu1 }
 0x4e6   : > { %v1270_v14 = vadd.f32 %v1554_v3, %v1269_v13  ;;  %1743 = vmatprep.mubr.msk.f32.mxu1 %vm699_vm1, %v1278_v9 }
 0x4e7   : > { %1744 = vmatmul.mubr.msk.f32.vlgmr.msra.gmra.mrb[8].mxu1 %vm699_vm1, %v1279_v11  ;;  %v1281_v16 = vmax.f32 %v1275_v12, 0.0 }
 0x4e8   : > { %v1280_v15 = vmax.f32 %v1270_v14, 0.0 }
 0x4ea   : > { %1746 = vmatprep.mubr.msk.f32.mxu1 %vm699_vm1, %v1280_v15 }
 0x4eb   : > { %1747 = vmatmul.mubr.msk.f32.gmra.mrb[10].mxu1 %vm699_vm1, %v1281_v16 }
 0x5ba   : > { %v1745_v18 = vpop.f32.mrb[8].mxu1 }
 0x5bb   : > { %v1381_v19 = vadd.f32 %v1745_v18, %v1559_v17  ;;  %v1375_v20 = vpop.f32.mrb[9].mxu1 }
 0x5bc   : > { %v1376_v21 = vadd.f32 %v1559_v17, %v1375_v20 }
 0x5bd   : > { %v1395_v22 = vadd.f32 %v1381_v19, %v2148_v60 }
 0x5be   : > { %v1394_v23 = vadd.f32 %v1376_v21, %v2150_v62  ;;  %v1748_v24 = vpop.f32.mrb[10].mxu1 }
 0x5bf   : > { %v1391_v25 = vadd.f32 %v1748_v24, %v1559_v17  ;;  %v1385_v26 = vpop.f32.mrb[11].mxu1 }
 0x5c0   : > { %v1581_v27 = vpack.c.bf16 %v1395_v22, %v1394_v23  ;;  %v1386_v28 = vadd.f32 %v1559_v17, %v1385_v26 }
 0x5c1   : > { %v1397_v29 = vadd.f32 %v1391_v25, %v2154_v2 }
 0x5c2   : > { %1582 = vst [vmem:[%s547_s26] sm:$0xff] %v1581_v27   ;;  %v1396_v30 = vadd.f32 %v1386_v28, %v2156_v5 }
 0x5c4   : > { %v1586_v60 = vpack.c.bf16 %v1397_v29, %v1396_v30 }
 0x5c6   : > { %1588 = vst [vmem:[%s547_s26 + $0x8] sm:$0xff] %v1586_v60  }
 0x5c7   : > { %1872 = shalt.err (!%p1869_p3)
}
 0x5c8   : > { %s1873_s19 = scalar_lea.hbm %s2234_s18, 256  ;;  %s1877_s29 = scalar_lea.hbm %s2293_s16, 512 }
 0x5c9   : > { %p1874_p4 = scmp.ne.s32.totalorder %s2234_s18, %s1873_s19  ;;  %p1878_p9 = scmp.lt.u32.totalorder %s2234_s18, %s2293_s16 }
 0x5ca   : > { %p1879_p10 = scmp.lt.u32.totalorder %s1877_s29, %s1873_s19  ;;  %p1881_p12 = scmp.lt.u32.totalorder %s1873_s19, %s2234_s18 }
 0x5cb   : > { %p1875_p7 = pnand %p1874_p4, %p2050_p5 }
 0x5cc   : > { %p1880_p11 = por %p1879_p10, %p1878_p9 }
 0x5cd   : > { %p1876_p8 = pneg %p1875_p7 }
 0x5ce   : > { %p1882_p13 = por %p1881_p12, %p1880_p11 }
 0x5d0   : > { %p1883_p0 = pnand %p1882_p13, %p1876_p8 }
 0x5d2   : > { %1886 = shalt.err (!%p1883_p0)
}
 0x5d3   : > { %s1925_s25 = smov 64   ;;  %s1926_s17 = smov 4  }
 0x5d4   : > { %1809 = dma.vmem_to_hbm [thread:$0]  (%p2050_p5), %s2229_s28, 256, %s2234_s18, %s2236_s21, %s1925_s25, %s1925_s25, %s1926_s17  }
 0x5d5 PF: > { %s2308_s20 = sld [smem:[#allocation5_spill]]  ;;  %p1815_p1 = scmp.ge.s32.totalorder %s1921_s24, 2 }
 0x5d7   : > { %p1812_p2 = pnand %p1815_p1, %p2054_p6 }
 0x5db   : > { %s1447_s30 = sand.u32 1, %s2308_s20  }
 0x5dc   : > { %s1448_s19 = scalar_lea.sflag [#allocation3], %s1447_s30 }
 0x5dd   : > { %1904 = dma.done.wait (!%p1812_p2), %s1448_s19, 256  }
 0x5de   : > { %1906 = vsyncadd (!%p1812_p2), %s1448_s19, 4294967040  ;;  %s2310_s24 = sld [smem:[#allocation7_spill]]  ;;  %s2311_s29 = sld [smem:[#allocation6_spill]] }
 0x5df   : > { %s2312_s23 = sld [smem:[#allocation8_spill]]  ;;  %s2313_s21 = smov %s1913_s22 }
 0x5e4   : > { %p26_p3 = scmp.ge.s32.totalorder %s2310_s24, 4   ;;  %s2314_s22 = smov %s2311_s29 }
 0x5e6   :  { %28 = sbr.rel (!%p26_p3) target bundleno = 5 (0x5), region = 125 }
 0x5ed   :  { %1453 = vsyncpa [#allocation3], 1 }
 0x5ee   :  { %1455 = vsyncpa [#allocation3 + $0x1], 1 }

</bundles_post_ra>
